<compile_context>
chip_gen: v7x
topology: tpu7x:2x2x1
jax: 0.10.0
libtpu: 0.0.40
codegen_flags: <defaults>
</compile_context>

<pallas_src>
import functools

import jax
import jax.numpy as jnp
from jax.experimental import pallas as pl
from jax.experimental.pallas import tpu as pltpu


def _round_up(x, m):
    return ((x + m - 1) // m) * m


def _cdiv(a, b):
    return -(-a // b)


def _default_eup_dtype():
    """bf16 transcendentals only where the EUP has a bf16 path (v6e / v7x)."""
    try:
        kind = jax.devices()[0].device_kind.lower()
    except Exception:
        return jnp.float32
    if "v6" in kind or "v7" in kind:
        return jnp.bfloat16
    return jnp.float32


def _osg_decoder_kernel(x_ref, w1_ref, b1_ref, w2_ref, b2_ref, y_ref, *,
                        compute_dtype, eup_dtype):
    # Cast the f32 input tile to bf16 on the VPU (in-kernel, hidden behind DMA).
    x = x_ref[0].astype(compute_dtype)                       # (C, tile)
    # Layer 1: (H, C) @ (C, tile) -> (H, tile), f32 accumulation on the MXU.
    h = jnp.dot(w1_ref[...], x, preferred_element_type=jnp.float32)
    h = h + b1_ref[...]                                      # (H, 1) broadcast
    # Numerically stable softplus (PyTorch default beta=1).  exp/log1p run at
    # eup_dtype (bf16 on v6e/v7x, f32 on v5e); max/add bookkeeping stays f32.
    neg_abs = (-jnp.abs(h)).astype(eup_dtype)
    soft_tail = jnp.log1p(jnp.exp(neg_abs)).astype(jnp.float32)
    h = jnp.maximum(h, 0.0) + soft_tail
    # Layer 2: bf16 x bf16 with f32 accumulation: (OUT, H) @ (H, tile).
    y = jnp.dot(w2_ref[...], h.astype(compute_dtype),
                preferred_element_type=jnp.float32)
    y = y + b2_ref[...]                                      # (OUT, 1) broadcast
    # Row 0 = sigma (raw), rows 1: = rgb = sigmoid(y) * (1 + 2*0.001) - 0.001.
    row = jax.lax.broadcasted_iota(jnp.int32, y.shape, 0)
    rgb = jax.nn.sigmoid(y) * (1.0 + 2.0 * 0.001) - 0.001
    y_ref[0] = jnp.where(row == 0, y, rgb).astype(y_ref.dtype)


def osg_decoder_forward(point_features, w1, b1, w2, b2, *, tile_m=8192,
                        compute_dtype=jnp.bfloat16, eup_dtype=None,
                        out_dtype=jnp.float32):
    """point_features: (N, C, M, 1).  w1: (H, C), w2: (OUT, H) effective
    weights (lr_multiplier / weight_gain already folded in).
    Returns {'rgb': (N, M, OUT-1), 'sigma': (N, M, 1)}."""
    N, C, M, _ = point_features.shape
    H = w1.shape[0]
    OUT = w2.shape[0]
    if eup_dtype is None:
        eup_dtype = _default_eup_dtype()

    # Metadata-only reshape; the big input goes to the kernel in its native
    # dtype (cast happens in-kernel, not as a separate HBM pass).
    x = jnp.squeeze(point_features, axis=-1)                  # (N, C, M)
    w1c = w1.astype(compute_dtype)
    w2c = w2.astype(compute_dtype)
    b1c = b1.reshape(H, 1).astype(jnp.float32)
    b2c = b2.reshape(OUT, 1).astype(jnp.float32)

    tile = min(_round_up(tile_m, 128), _round_up(M, 128))
    if N == 1 and M > 128:
        # Keep >= 2 grid steps so both v7x TensorCores get work.
        tile = min(tile, max(128, _round_up(_cdiv(M, 2), 128)))
    n_tiles = _cdiv(M, tile)

    rows = N * M
    cost = pl.CostEstimate(
        flops=2 * rows * (C * H + H * OUT),
        # softplus = exp + log1p per hidden unit; sigmoid = exp + recip per out.
        transcendentals=rows * (2 * H + 2 * OUT),
        bytes_accessed=(rows * C * x.dtype.itemsize
                        + rows * OUT * jnp.dtype(out_dtype).itemsize
                        + (H * C + OUT * H) * jnp.dtype(compute_dtype).itemsize
                        + (H + OUT) * 4),
    )

    kernel = functools.partial(_osg_decoder_kernel,
                               compute_dtype=compute_dtype,
                               eup_dtype=eup_dtype)

    y = pl.pallas_call(
        kernel,
        out_shape=jax.ShapeDtypeStruct((N, OUT, M), out_dtype),
        grid_spec=pltpu.PrefetchScalarGridSpec(
            num_scalar_prefetch=0,
            grid=(N, n_tiles),
            in_specs=[
                pl.BlockSpec((1, C, tile), lambda n, m: (n, 0, m)),  # x tile
                pl.BlockSpec((H, C), lambda n, m: (0, 0)),           # W1 (resident)
                pl.BlockSpec((H, 1), lambda n, m: (0, 0)),           # b1
                pl.BlockSpec((OUT, H), lambda n, m: (0, 0)),         # W2 (resident)
                pl.BlockSpec((OUT, 1), lambda n, m: (0, 0)),         # b2
            ],
            out_specs=pl.BlockSpec((1, OUT, tile), lambda n, m: (n, 0, m)),
        ),
        compiler_params=pltpu.CompilerParams(
            dimension_semantics=("parallel", "parallel")),
        cost_estimate=cost,
    )(x, w1c, b1c, w2c, b2c)

    # y: (N, OUT, M) -- row 0 is sigma, rows 1: are post-processed rgb.
    # Only this tiny (OUT = 4 channel) tensor is transposed, never the input.
    # TODO(synk): let the consumer take the channel-major (N, OUT, M) slab
    # directly to drop these two small HBM-bound transpose passes.
    sigma = jnp.transpose(y[:, 0:1, :], (0, 2, 1))            # (N, M, 1)
    rgb = jnp.transpose(y[:, 1:, :], (0, 2, 1))               # (N, M, OUT-1)
    return {'rgb': rgb, 'sigma': sigma}


def make_params(key, n_features, hidden_dim, out_dim, lr_multiplier):
    """Deterministic init mimicking EG3D FullyConnectedLayer, with the
    lr_multiplier / weight_gain scaling folded into effective weights.
    Returned orientation matches the kernel: w1 (H, C), w2 (OUT, H)."""
    k1, k2 = jax.random.split(key, 2)
    w1_raw = jax.random.normal(k1, (hidden_dim, n_features), jnp.float32) / lr_multiplier
    b1_raw = jnp.zeros((hidden_dim,), jnp.float32)
    w2_raw = jax.random.normal(k2, (out_dim, hidden_dim), jnp.float32) / lr_multiplier
    b2_raw = jnp.zeros((out_dim,), jnp.float32)
    w1_eff = w1_raw * (lr_multiplier / (float(n_features) ** 0.5))   # (H, C)
    b1_eff = b1_raw * lr_multiplier
    w2_eff = w2_raw * (lr_multiplier / (float(hidden_dim) ** 0.5))   # (OUT, H)
    b2_eff = b2_raw * lr_multiplier
    return w1_eff, b1_eff, w2_eff, b2_eff


def _reference(point_features, w1, b1, w2, b2, compute_dtype=jnp.bfloat16):
    """Pure-JAX reference mimicking the kernel's bf16 MXU-input rounding
    (f32 accumulation, f32 softplus) -- matches the PyTorch math."""
    x = jnp.transpose(jnp.squeeze(point_features, -1), (0, 2, 1))     # (N, M, C)
    N, M, C = x.shape
    xr = x.reshape(N * M, C).astype(compute_dtype).astype(jnp.float32)
    w1r = w1.astype(compute_dtype).astype(jnp.float32)
    w2r = w2.astype(compute_dtype).astype(jnp.float32)
    h = jnp.matmul(xr, w1r.T, precision=jax.lax.Precision.HIGHEST) + b1
    h = jax.nn.softplus(h)
    h = h.astype(compute_dtype).astype(jnp.float32)
    y = jnp.matmul(h, w2r.T, precision=jax.lax.Precision.HIGHEST) + b2
    rgb = jax.nn.sigmoid(y[:, 1:]) * (1.0 + 2.0 * 0.001) - 0.001
    sigma = y[:, 0:1]
    return rgb.reshape(N, M, -1), sigma.reshape(N, M, 1)


if __name__ == "__main__":
    hidden_dim = 64
    decoder_output_dim = 3          # rgb has 3 channels
    out_dim = 1 + decoder_output_dim
    decoder_lr_mul = 1.0
    C = 32

    key = jax.random.PRNGKey(0)
    k_in1, k_in2, k_par = jax.random.split(key, 3)
    w1, b1, w2, b2 = make_params(k_par, C, hidden_dim, out_dim, decoder_lr_mul)

    # Tolerances allow for bf16 MXU inputs / bf16 h / possible bf16 EUP path.
    RGB_TOL, SIGMA_TOL = 2e-2, 1e-1

    # Case 1: N=2, M multiple of 128 (single full tile per batch element).
    N1, M1 = 2, 512
    pf1 = jax.random.normal(k_in1, (N1, C, M1, 1), jnp.float32)
    out1 = osg_decoder_forward(pf1, w1, b1, w2, b2)
    jax.block_until_ready(out1)
    rgb_ref1, sigma_ref1 = _reference(pf1, w1, b1, w2, b2)
    assert out1['rgb'].shape == (N1, M1, decoder_output_dim)
    assert out1['sigma'].shape == (N1, M1, 1)
    assert float(jnp.max(jnp.abs(out1['rgb'] - rgb_ref1))) < RGB_TOL
    assert float(jnp.max(jnp.abs(out1['sigma'] - sigma_ref1))) < SIGMA_TOL

    # Case 2: N=1 with a ragged M (exercises the partial boundary tile and the
    # n_tiles >= 2 clamp for v7x megacore).
    N2, M2 = 1, 200
    pf2 = jax.random.normal(k_in2, (N2, C, M2, 1), jnp.float32)
    out2 = osg_decoder_forward(pf2, w1, b1, w2, b2)
    jax.block_until_ready(out2)
    rgb_ref2, sigma_ref2 = _reference(pf2, w1, b1, w2, b2)
    assert out2['rgb'].shape == (N2, M2, decoder_output_dim)
    assert out2['sigma'].shape == (N2, M2, 1)
    assert float(jnp.max(jnp.abs(out2['rgb'] - rgb_ref2))) < RGB_TOL
    assert float(jnp.max(jnp.abs(out2['sigma'] - sigma_ref2))) < SIGMA_TOL

    print("KERNEL_OK")
</pallas_src>

<mosaic_0001>
module attributes {stable_mosaic.version = 11 : i64} {
  func.func @_osg_decoder_kernel(%arg0: i32, %arg1: i32, %arg2: memref<1x32x512xf32, #tpu.memory_space<vmem>>, %arg3: memref<64x32xbf16, #tpu.memory_space<vmem>>, %arg4: memref<64x1xf32, #tpu.memory_space<vmem>>, %arg5: memref<4x64xbf16, #tpu.memory_space<vmem>>, %arg6: memref<4x1xf32, #tpu.memory_space<vmem>>, %arg7: memref<1x4x512xf32, #tpu.memory_space<vmem>>) attributes {dimension_semantics = [#tpu.dimension_semantics<parallel>, #tpu.dimension_semantics<parallel>], iteration_bounds = array<i64: 2, 1>, scalar_prefetch = 0 : i64, scratch_operands = 0 : i64, tpu.core_type = #tpu.core_type<tc>, window_params = [{transform_indices = @transform_0, window_bounds = array<i64: 1, 32, 512>}, {pipeline_mode = #tpu.pipeline_mode<synchronous>, transform_indices = @transform_1, window_bounds = array<i64: 64, 32>}, {pipeline_mode = #tpu.pipeline_mode<synchronous>, transform_indices = @transform_2, window_bounds = array<i64: 64, 1>}, {pipeline_mode = #tpu.pipeline_mode<synchronous>, transform_indices = @transform_3, window_bounds = array<i64: 4, 64>}, {pipeline_mode = #tpu.pipeline_mode<synchronous>, transform_indices = @transform_4, window_bounds = array<i64: 4, 1>}, {transform_indices = @transform_5, window_bounds = array<i64: 1, 4, 512>}]} {
    %c0 = arith.constant 0 : index
    %c0_0 = arith.constant 0 : index
    %c0_1 = arith.constant 0 : index
    %0 = vector.load %arg2[%c0, %c0_0, %c0_1] : memref<1x32x512xf32, #tpu.memory_space<vmem>>, vector<1x32x512xf32>
    %1 = vector.shape_cast %0 : vector<1x32x512xf32> to vector<32x512xf32>
    %2 = arith.truncf %1 : vector<32x512xf32> to vector<32x512xbf16>
    %c0_2 = arith.constant 0 : index
    %c0_3 = arith.constant 0 : index
    %3 = vector.load %arg3[%c0_2, %c0_3] : memref<64x32xbf16, #tpu.memory_space<vmem>>, vector<64x32xbf16>
    %cst = arith.constant dense<0.000000e+00> : vector<64x512xf32>
    %4 = tpu.matmul %3, %2, %cst {dimension_numbers = #tpu.dot_dimension_numbers<[1], [0], [0], [1], [0, 0, 1, 1], [], []>} : vector<64x32xbf16>, vector<32x512xbf16>, vector<64x512xf32> -> vector<64x512xf32>
    %c0_4 = arith.constant 0 : index
    %c0_5 = arith.constant 0 : index
    %5 = vector.load %arg4[%c0_4, %c0_5] : memref<64x1xf32, #tpu.memory_space<vmem>>, vector<64x1xf32>
    %6 = vector.broadcast %5 : vector<64x1xf32> to vector<64x512xf32>
    %7 = arith.addf %4, %6 : vector<64x512xf32>
    %8 = math.absf %7 : vector<64x512xf32>
    %cst_6 = arith.constant 0.000000e+00 : f32
    %9 = vector.broadcast %cst_6 : f32 to vector<64x512xf32>
    %10 = arith.subf %9, %8 : vector<64x512xf32>
    %11 = math.exp %10 : vector<64x512xf32>
    %12 = math.log1p %11 : vector<64x512xf32>
    %cst_7 = arith.constant 0.000000e+00 : f32
    %13 = vector.broadcast %cst_7 : f32 to vector<64x512xf32>
    %14 = arith.maximumf %7, %13 : vector<64x512xf32>
    %15 = arith.addf %14, %12 : vector<64x512xf32>
    %c0_8 = arith.constant 0 : index
    %c0_9 = arith.constant 0 : index
    %16 = vector.load %arg5[%c0_8, %c0_9] : memref<4x64xbf16, #tpu.memory_space<vmem>>, vector<4x64xbf16>
    %17 = arith.truncf %15 : vector<64x512xf32> to vector<64x512xbf16>
    %cst_10 = arith.constant dense<0.000000e+00> : vector<4x512xf32>
    %18 = tpu.matmul %16, %17, %cst_10 {dimension_numbers = #tpu.dot_dimension_numbers<[1], [0], [0], [1], [0, 0, 1, 1], [], []>} : vector<4x64xbf16>, vector<64x512xbf16>, vector<4x512xf32> -> vector<4x512xf32>
    %c0_11 = arith.constant 0 : index
    %c0_12 = arith.constant 0 : index
    %19 = vector.load %arg6[%c0_11, %c0_12] : memref<4x1xf32, #tpu.memory_space<vmem>>, vector<4x1xf32>
    %20 = vector.broadcast %19 : vector<4x1xf32> to vector<4x512xf32>
    %21 = arith.addf %18, %20 : vector<4x512xf32>
    %22 = tpu.iota {dimensions = array<i32: 0>} : vector<4x512xi32>
    %23 = arith.negf %21 : vector<4x512xf32>
    %24 = math.exp %23 : vector<4x512xf32>
    %cst_13 = arith.constant 1.000000e+00 : f32
    %25 = vector.broadcast %cst_13 : f32 to vector<4x512xf32>
    %26 = arith.addf %25, %24 : vector<4x512xf32>
    %27 = arith.divf %25, %26 : vector<4x512xf32>
    %cst_14 = arith.constant 1.002000e+00 : f32
    %28 = vector.broadcast %cst_14 : f32 to vector<4x512xf32>
    %29 = arith.mulf %27, %28 : vector<4x512xf32>
    %cst_15 = arith.constant 1.000000e-03 : f32
    %30 = vector.broadcast %cst_15 : f32 to vector<4x512xf32>
    %31 = arith.subf %29, %30 : vector<4x512xf32>
    %c0_i32 = arith.constant 0 : i32
    %32 = vector.broadcast %c0_i32 : i32 to vector<4x512xi32>
    %33 = arith.cmpi eq, %22, %32 : vector<4x512xi32>
    %34 = arith.select %33, %21, %31 : vector<4x512xi1>, vector<4x512xf32>
    %c0_16 = arith.constant 0 : index
    %c0_17 = arith.constant 0 : index
    %c0_18 = arith.constant 0 : index
    %35 = vector.load %arg7[%c0_16, %c0_17, %c0_18] : memref<1x4x512xf32, #tpu.memory_space<vmem>>, vector<1x4x512xf32>
    %36 = vector.shape_cast %35 : vector<1x4x512xf32> to vector<4x512xf32>
    %37 = vector.shape_cast %34 : vector<4x512xf32> to vector<1x4x512xf32>
    tpu.vector_store %arg7[%c0_16, %c0_17, %c0_18], %37 {strides = array<i32>} : memref<1x4x512xf32, #tpu.memory_space<vmem>>, vector<1x4x512xf32>,
    return
  }
  func.func @transform_0(%arg0: i32, %arg1: i32) -> (i32, i32, i32) {
    %c0_i32 = arith.constant 0 : i32
    %c0_i32_0 = arith.constant 0 : i32
    return %arg0, %c0_i32, %arg1 : i32, i32, i32
  }
  func.func @transform_1(%arg0: i32, %arg1: i32) -> (i32, i32) {
    %c0_i32 = arith.constant 0 : i32
    %c0_i32_0 = arith.constant 0 : i32
    %c0_i32_1 = arith.constant 0 : i32
    return %c0_i32, %c0_i32_0 : i32, i32
  }
  func.func @transform_2(%arg0: i32, %arg1: i32) -> (i32, i32) {
    %c0_i32 = arith.constant 0 : i32
    %c0_i32_0 = arith.constant 0 : i32
    %c0_i32_1 = arith.constant 0 : i32
    return %c0_i32, %c0_i32_0 : i32, i32
  }
  func.func @transform_3(%arg0: i32, %arg1: i32) -> (i32, i32) {
    %c0_i32 = arith.constant 0 : i32
    %c0_i32_0 = arith.constant 0 : i32
    %c0_i32_1 = arith.constant 0 : i32
    return %c0_i32, %c0_i32_0 : i32, i32
  }
  func.func @transform_4(%arg0: i32, %arg1: i32) -> (i32, i32) {
    %c0_i32 = arith.constant 0 : i32
    %c0_i32_0 = arith.constant 0 : i32
    %c0_i32_1 = arith.constant 0 : i32
    return %c0_i32, %c0_i32_0 : i32, i32
  }
  func.func @transform_5(%arg0: i32, %arg1: i32) -> (i32, i32, i32) {
    %c0_i32 = arith.constant 0 : i32
    %c0_i32_0 = arith.constant 0 : i32
    return %arg0, %c0_i32, %arg1 : i32, i32, i32
  }
}

</mosaic_0001>

<bundles_post_ra>
// kernel: tpu_custom_call.1
= control target key start
LH: loop header
LB: loop body
LE: loop exit
PB: predicated region body
PF: predicated region fallthrough
CT: control target
= control target key end

     0   :  { %10 = vsyncpa [#allocation3], 0  ;;  %s2585_s0 = inlined_call_operand.hbm [shape: f32[2,32,512], index: 0, kind: input, shape index: {}]   ;;  %s2586_s1 = inlined_call_operand.vmem [shape: bf16[64,32], index: 1, kind: input, shape index: {}]   ;;  %s2587_s2 = inlined_call_operand.vmem [shape: f32[64,1], index: 2, kind: input, shape index: {}]   ;;  %s2588_s3 = inlined_call_operand.vmem [shape: bf16[4,64], index: 3, kind: input, shape index: {}]   ;;  %s2589_s4 = inlined_call_operand.vmem [shape: f32[4,1], index: 4, kind: input, shape index: {}]   ;;  %s2590_s5 = inlined_call_operand.hbm [shape: f32[2,4,512], index: 5, kind: output, shape index: {}]  }
   0x1   :  { %12 = vsyncpa [#allocation3 + $0x1], 0 }
   0x2   :  { %13 = vsyncpa [#allocation4], 0 }
   0x3   :  { %15 = vsyncpa [#allocation4 + $0x1], 0  ;;  %s1665_s18 = smov 0   ;;  %s1667_s19 = smov 0  }
   0x4   :  { %s1669_s20 = smov 0   ;;  %s1671_s21 = smov 0  }
   0x5   :  { %s1673_s22 = smov 0   ;;  %s1675_s23 = smov 0  }
   0x6 LB: > { %s1262_s24 = sadd.s32 4294967295, %s1628_s23   ;;  %s1263_s25 = sadd.s32 4294967294, %s1628_s23   ;;  %s1628_s23 = sphi %s1675_s23, %s21_s23   ;;  %s1624_s22 = sphi %s1673_s22, %s2708_s22   ;;  %s1620_s21 = sphi %s1671_s21, %s2707_s21   ;;  %s1616_s20 = sphi %s1669_s20, %s2706_s20   ;;  %s1612_s19 = sphi %s1667_s19, %s2705_s19   ;;  %s1608_s18 = sphi %s1665_s18, %s2704_s18  }
   0x7   : > { %s33_s26 = sadd.s32 1, %s1624_s22  ;;  %s42_s27 = sadd.s32 1, %s1616_s20 }
   0x8   : > { %p35_p0 = scmp.ge.s32.totalorder %s33_s26, 2  ;;  %p49_p1 = scmp.ne.s32.totalorder %s1616_s20, %s1612_s19 }
   0x9   : > { %p50_p2 = scmp.eq.s32.totalorder %s1628_s23, 0  ;;  %p55_p3 = scmp.ne.s32.totalorder %s1612_s19, %s1608_s18 }
   0xa   : > { %s2710_s26 = smov (%p35_p0, %s33_s26), 0  ;;  %p56_p5 = scmp.eq.s32.totalorder %s1262_s24, 0 }
   0xb   : > { %p1706_p4 = por %p50_p2, %p49_p1  ;;  %s37_s29 = ssub.s32 %s1624_s22, %s2710_s26 }
   0xc   : > { %p165_p6 = scmp.eq.s32.totalorder %s1262_s24, 1  ;;  %p40_p7 = scmp.eq.s32.totalorder %s37_s29, 0 }
   0xd   : > { %p1712_p8 = por %p56_p5, %p55_p3  ;;  %p171_p10 = scmp.eq.s32.totalorder %s1263_s25, 1 }
   0xe   : > { %p1716_p9 = por %p165_p6, %p49_p1  ;;  %p1313_p13 = scmp.lt.s32.totalorder %s1628_s23, 2 }
   0xf   : > { %s1721_s7 = scalar_select %p40_p7, %s1616_s20, %s42_s27  }
  0x10   : > { %s2605_s6 = scalar_select %p1716_p9, 1, 0 }
  0x11   : > { %p1723_p11 = por %p171_p10, %p55_p3  ;;  %s203_s9 = sand.u32 1, %s1616_s20  }
  0x12   : > { %s1266_s10 = sshll.u32 %s203_s9, 7  ;;  %s1299_s11 = sshll.u32 %s1624_s22, 11 }
  0x13   : > { %s2606_s8 = scalar_select %p1723_p11, 1, 0 }
  0x14   : > { %s1734_s14 = scalar_lea.hbm %s2585_s0, %s1299_s11  ;;  %s207_s15 = scalar_lea.vmem [#allocation2], %s1266_s10 }
  0x15   : > { %s216_s16 = sshll.u32 %s207_s15, 4  ;;  %p1740_p0 = pnand %p1313_p13, %p1706_p4  ;;  %s1736_s16 = int_to_ptr.vmem [resolvable:$true] %s216_s16 }
  0x16   : > { %s1745_s24 = scalar_lea.sflag [#allocation3], %s203_s9  ;;  %s1516_s25 = scalar_lea.hbm %s1734_s14, 2048 }
  0x17   : > { %p1517_p2 = scmp.ne.s32.totalorder %s1734_s14, %s1516_s25  ;;  %p1518_p3 = pneg %p1740_p0 }
  0x18   : > { %s1521_s28 = scalar_lea.hbm %s2585_s0, 4096  ;;  %p1522_p4 = scmp.lt.u32.totalorder %s1734_s14, %s2585_s0 }
  0x19   : > { %p1519_p5 = pnand %p1518_p3, %p1517_p2  ;;  %p1523_p7 = scmp.lt.u32.totalorder %s1521_s28, %s1516_s25 }
  0x1a   : > { %p1525_p13 = scmp.lt.u32.totalorder %s1516_s25, %s1734_s14 }
  0x1b   : > { %p1520_p6 = pneg %p1519_p5  ;;  %p1524_p10 = por %p1523_p7, %p1522_p4 }
  0x1d   : > { %p1526_p12 = por %p1525_p13, %p1524_p10 }
  0x1f   : > { %p1527_p1 = pnand %p1526_p12, %p1520_p6 }
  0x21   : > { %1530 = shalt.err (!%p1527_p1)
}
  0x22   : > { %s1531_s9 = scalar_lea.vmem %s1736_s16, 2048  ;;  %s1630_s12 = smov [#allocation2]  }
  0x23   : > { %p1532_p2 = scmp.ne.s32.totalorder %s1736_s16, %s1531_s9  ;;  %s1536_s13 = sshll.u32 %s1630_s12, 4  ;;  %s1537_s13 = int_to_ptr.vmem [resolvable:$false] %s1536_s13 }
  0x24   : > { %s1538_s15 = scalar_lea.vmem %s1537_s13, 4096  ;;  %p1539_p9 = scmp.lt.s32.totalorder %s1736_s16, %s1537_s13 }
  0x25   : > { %p1534_p5 = pnand %p1532_p2, %p1518_p3  ;;  %p1540_p4 = scmp.lt.s32.totalorder %s1538_s15, %s1531_s9 }
  0x27   : > { %p1535_p11 = pneg %p1534_p5  ;;  %p1541_p7 = por %p1540_p4, %p1539_p9 }
  0x29   : > { %p1542_p10 = pnand %p1541_p7, %p1535_p11 }
  0x2b   : > { %1545 = shalt.err (!%p1542_p10)
}
  0x2c   : > { %s1631_s25 = smov 512   ;;  %s1632_s27 = smov 32  }
  0x2d   : > { %1308 = dma.hbm_to_vmem [thread:$0]  (!%p1740_p0), %s1734_s14, 2048, %s1736_s16, %s1745_s24, %s1631_s25, %s1631_s25, %s1632_s27  }
  0x2e   : > { %p224_p12 = scmp.lt.s32.totalorder %s1628_s23, 3  ;;  %p2608_p1 = scmp.ge.s32.totalorder %s1628_s23, 1 }
  0x30   : > { %p225_p3 = pnand %p2608_p1, %p224_p12 }
  0x32   : > { %228 = sbr.rel (%p225_p3) target bundleno = 702 (0x2be), region = 40 }
  0x39   : > { %s1777_s29 = sand.u32 1, %s1612_s19  }
  0x3a   : > { %s1270_s28 = sshll.u32 %s1777_s29, 7  ;;  %s231_s10 = scalar_lea.sflag [#allocation3], %s1777_s29 }
  0x3b   : > { %s1781_s11 = scalar_lea.vmem [#allocation2], %s1270_s28 }
  0x3c   : > { %1599 = dma.done.wait (%p1712_p8), %s231_s10, 2048  }
  0x3d   : > { %1601 = vsyncadd (%p1712_p8), %s231_s10, 4294965248  ;;  %v1633_v0 = vmov 0   ;;  %v265_v1 = vld [vmem:[%s1781_s11 + $0x8] sm:$0xff]  ;;  %v267_v3 = vld [vmem:[%s1781_s11 + $0x18] sm:$0xff]  ;;  %vm364_vm0 = vcmask 261120   ;;  %s1271_s30 = sshll.u32 %s1777_s29, 4 }
  0x3e   : > { %409 = vmatprep.mubr.bf16.mxu0 %v1633_v0  ;;  %482 = vmatprep.mubr.bf16.mxu1 %v1633_v0  ;;  %v269_v2 = vld [vmem:[%s1781_s11 + $0x28] sm:$0xff]  ;;  %v271_v5 = vld [vmem:[%s1781_s11 + $0x38] sm:$0xff]  ;;  %v264_v6 = vld [vmem:[%s1781_s11] sm:$0xff]  ;;  %s260_s14 = scalar_lea.vmem [#allocation5], %s1271_s30  ;;  %s1300_s16 = sshll.u32 %s1620_s21, 8 }
  0x3f   : > { %1366 = vset.pattern.permute.xlu0 %v1633_v0  ;;  %1367 = vset.pattern.permute.xlu1 %v1633_v0  ;;  %v281_v4 = vpack.c.bf16 %v269_v2, %v265_v1  ;;  %v268_v7 = vld [vmem:[%s1781_s11 + $0x20] sm:$0xff]  ;;  %v283_v8 = vpack.c.bf16 %v271_v5, %v267_v3  ;;  %v266_v10 = vld [vmem:[%s1781_s11 + $0x10] sm:$0xff]  ;;  %v273_v12 = vld [vmem:[%s1781_s11 + $0x48] sm:$0xff]  ;;  %s1178_s17 = sshll.u32 %s260_s14, 4  ;;  %s2536_s12 = scalar_lea.hbm %s2590_s5, %s1300_s16  ;;  %s2538_s17 = int_to_ptr.vmem [resolvable:$true] %s1178_s17 }
  0x40   : > { %v280_v9 = vpack.c.bf16 %v268_v7, %v264_v6  ;;  %v270_v11 = vld [vmem:[%s1781_s11 + $0x30] sm:$0xff]  ;;  %v277_v14 = vld [vmem:[%s1781_s11 + $0x68] sm:$0xff]  ;;  %v275_v15 = vld [vmem:[%s1781_s11 + $0x58] sm:$0xff]  ;;  %s1162_s13 = scalar_lea.sflag [#allocation4], %s1777_s29  ;;  %s1546_s15 = scalar_lea.vmem %s2538_s17, 256 }
  0x41   : > { %377 = vmatprep.subr.bf16.mxu0 %v281_v4  ;;  %v282_v13 = vpack.c.bf16 %v270_v11, %v266_v10  ;;  %v279_v16 = vld [vmem:[%s1781_s11 + $0x78] sm:$0xff]  ;;  %450 = vmatprep.subr.bf16.mxu1 %v283_v8  ;;  %v285_v17 = vpack.c.bf16 %v277_v14, %v273_v12  ;;  %v272_v19 = vld [vmem:[%s1781_s11 + $0x40] sm:$0xff]  ;;  %v274_v21 = vld [vmem:[%s1781_s11 + $0x50] sm:$0xff]  ;;  %p1547_p8 = scmp.ne.s32.totalorder %s2538_s17, %s1546_s15  ;;  %p2701_p9 = scmp.ne.s32.totalorder %s2605_s6, 0 }
  0x42   : > { %378 = vmatpush1.bf16.msra.mxu0 %v280_v9  ;;  %v287_v18 = vpack.c.bf16 %v279_v16, %v275_v15  ;;  %v276_v20 = vld [vmem:[%s1781_s11 + $0x60] sm:$0xff]  ;;  %v278_v23 = vld [vmem:[%s1781_s11 + $0x70] sm:$0xff]  ;;  %v297_v28 = vld [vmem:[%s2587_s2 + $0x8] sm:$0xff]  ;;  %s1634_s21 = smov [#allocation5]  }
  0x43   : > { %451 = vmatpush1.bf16.msra.mxu1 %v282_v13  ;;  %v284_v22 = vpack.c.bf16 %v276_v20, %v272_v19  ;;  %379 = vmatprep.subr.bf16.mxu0 %v285_v17  ;;  %v286_v24 = vpack.c.bf16 %v278_v23, %v274_v21  ;;  %v1368_v25 = vld [vmem:[%s2586_s1] sm:$0xff]   ;;  %v298_v27 = vld [vmem:[%s2587_s2 + $0x10] sm:$0xff]  ;;  %v299_v29 = vld [vmem:[%s2587_s2 + $0x18] sm:$0xff]  ;;  %p1548_p11 = pnand %p1547_p8, %p2701_p9  ;;  %s1550_s25 = sshll.u32 %s1634_s21, 4  ;;  %s1551_s25 = int_to_ptr.vmem [resolvable:$false] %s1550_s25 }
  0x44   : > { %452 = vmatprep.subr.bf16.mxu1 %v287_v18  ;;  %v296_v26 = vld [vmem:[%s2587_s2] sm:$0xff]  ;;  %316 = vperm.xlu1 %1367, %v298_v27   ;;  %v1369_v30 = vld [vmem:[%s2586_s1 + $0x8] sm:$0xff]   ;;  %v302_v33 = vld [vmem:[%s2587_s2 + $0x30] sm:$0xff]  ;;  %s1552_s27 = scalar_lea.vmem %s1551_s25, 512  ;;  %p1553_p6 = scmp.lt.s32.totalorder %s2538_s17, %s1551_s25 }
  0x45   : > { %306 = vperm.xlu0 %1366, %v296_v26   ;;  %v300_v31 = vld [vmem:[%s2587_s2 + $0x20] sm:$0xff]  ;;  %v301_v32 = vld [vmem:[%s2587_s2 + $0x28] sm:$0xff]  ;;  %v303_v34 = vld [vmem:[%s2587_s2 + $0x38] sm:$0xff]  ;;  %p1549_p0 = pneg %p1548_p11  ;;  %p1554_p13 = scmp.lt.s32.totalorder %s1552_s27, %s1546_s15 }
  0x46   : > { %380 = vmatpush1.bf16.msra.mxu0 %v284_v22  ;;  %v1370_v35 = vld [vmem:[%s2586_s1 + $0x10] sm:$0xff]   ;;  %v1020_v36 = vld [vmem:[%s2589_s4] sm:$0xf]  ;;  %v1371_v37 = vld [vmem:[%s2586_s1 + $0x18] sm:$0xff]  }
  0x47   : > { %453 = vmatpush1.bf16.msra.mxu1 %v286_v24  ;;  %p1555_p2 = por %p1554_p13, %p1553_p6 }
  0x48   : > { %321 = vperm.xlu1 %1367, %v299_v29  }
  0x49   : > { %1276 = vmatmul.mubr.msk.bf16.vlgmr.msra.gmra.mrb[0].mxu0 %vm364_vm0, %v1368_v25  ;;  %311 = vperm.xlu0 %1366, %v297_v28   ;;  %p1556_p5 = pnand %p1555_p2, %p1549_p0 }
  0x4a   : > { %1280 = vmatmul.mubr.msk.bf16.vlgmr.msra.gmra.mrb[0].mxu1 %vm364_vm0, %v1368_v25  ;;  %419 = vmatprep.mubr.bf16.mxu0 %v1633_v0 }
  0x4b   : > { %492 = vmatprep.mubr.bf16.mxu1 %v1633_v0 }
  0x4c   : > { %331 = vperm.xlu1 %1367, %v301_v32  }
  0x4d   : > { %326 = vperm.xlu0 %1366, %v300_v31  }
  0x50   : > { %341 = vperm.xlu1 %1367, %v303_v34  }
  0x51   : > { %1277 = vmatmul.mubr.msk.bf16.gmra.mrb[4].mxu0 %vm364_vm0, %v1369_v30  ;;  %336 = vperm.xlu0 %1366, %v302_v33  }
  0x52   : > { %1281 = vmatmul.mubr.msk.bf16.gmra.mrb[4].mxu1 %vm364_vm0, %v1369_v30  ;;  %429 = vmatprep.mubr.bf16.mxu0 %v1633_v0 }
  0x53   : > { %502 = vmatprep.mubr.bf16.mxu1 %v1633_v0 }
  0x55   : > { %1023 = vperm.xlu0 %1366, %v1020_v36  }
  0x59   : > { %1278 = vmatmul.mubr.msk.bf16.gmra.mrb[8].mxu0 %vm364_vm0, %v1370_v35 }
  0x5a   : > { %1282 = vmatmul.mubr.msk.bf16.gmra.mrb[8].mxu1 %vm364_vm0, %v1370_v35  ;;  %439 = vmatprep.mubr.bf16.mxu0 %v1633_v0 }
  0x5b   : > { %512 = vmatprep.mubr.bf16.mxu1 %v1633_v0 }
  0x61   : > { %1279 = vmatmul.mubr.msk.bf16.gmra.mrb[12].mxu0 %vm364_vm0, %v1371_v37 }
  0x62   : > { %1283 = vmatmul.mubr.msk.bf16.gmra.mrb[12].mxu1 %vm364_vm0, %v1371_v37  ;;  %1062 = vmatprep.mubr.bf16.mxu0 %v1633_v0 }
  0x63   : > { %1103 = vmatprep.mubr.bf16.mxu1 %v1633_v0 }
  0xc3   : > { %v317_v20 = vpop.permute.xlu1 %316 }
  0xc4   : > { %v307_v38 = vpop.permute.xlu0 %306 }
  0xc8   : > { %v312_v39 = vpop.permute.xlu0 %311 }
 0x11c   : > { %v411_v40 = vpop.f32.mrb[0].mxu0 }
 0x11d   : > { %v1862_v41 = vadd.f32 %v411_v40, %v307_v38  ;;  %v484_v42 = vpop.f32.mrb[0].mxu1  ;;  %v413_v43 = vpop.f32.mrb[1].mxu0 }
 0x11e   : > { %v1864_v44 = vadd.f32 %v484_v42, %v307_v38  ;;  %v486_v45 = vpop.f32.mrb[1].mxu1  ;;  %v415_v46 = vpop.f32.mrb[2].mxu0  ;;  %v1870_v52 = vadd.f32 %v413_v43, %v307_v38 }
 0x11f   : > { %v523_v47 = vand.u32 2147483647, %v1862_v41  ;;  %v1867_v48 = vadd.f32 %v415_v46, %v312_v39  ;;  %v488_v49 = vpop.f32.mrb[2].mxu1  ;;  %v417_v50 = vpop.f32.mrb[3].mxu0  ;;  %v1875_v59 = vadd.f32 %v486_v45, %v307_v38 }
 0x120   : > { %v525_v51 = vand.u32 2147483647, %v1864_v44  ;;  %v1873_v56 = vadd.f32 %v488_v49, %v312_v39  ;;  %v490_v57 = vpop.f32.mrb[3].mxu1  ;;  %v524_v62 = vand.u32 2147483647, %v1870_v52  ;;  %v1879_v3 = vadd.f32 %v417_v50, %v312_v39 }
 0x121   : > { %v555_v53 = vsub.f32 0.0, %v523_v47  ;;  %v527_v54 = vand.u32 2147483647, %v1867_v48  ;;  %v526_v6 = vand.u32 2147483647, %v1875_v59  ;;  %v1882_v7 = vadd.f32 %v490_v57, %v312_v39 }
 0x122   : > { %v557_v55 = vsub.f32 0.0, %v525_v51  ;;  %v529_v63 = vand.u32 2147483647, %v1873_v56  ;;  %v556_v10 = vsub.f32 0.0, %v524_v62  ;;  %v528_v15 = vand.u32 2147483647, %v1879_v3 }
 0x123   : > { %v587_v58 = vmul.f32 1.442695, %v555_v53  ;;  %v559_v60 = vsub.f32 0.0, %v527_v54  ;;  %v558_v16 = vsub.f32 0.0, %v526_v6  ;;  %v530_v17 = vand.u32 2147483647, %v1882_v7 }
 0x124   : > { %v591_v61 = vmul.f32 1.442695, %v557_v55  ;;  %v421_v1 = vpop.f32.mrb[4].mxu0  ;;  %v561_v2 = vsub.f32 0.0, %v529_v63  ;;  %v589_v18 = vmul.f32 1.442695, %v556_v10 }
 0x125   : > { %1372 = vpow2.f32 %v587_v58  ;;  %v595_v0 = vmul.f32 1.442695, %v559_v60  ;;  %v494_v4 = vpop.f32.mrb[4].mxu1  ;;  %v423_v5 = vpop.f32.mrb[5].mxu0  ;;  %v560_v22 = vsub.f32 0.0, %v528_v15  ;;  %v1900_v23 = vadd.f32 %v421_v1, %v317_v20 }
 0x126   : > { %1374 = vpow2.f32 %v591_v61  ;;  %v1884_v8 = vpop.f32.mrb[5].mxu1  ;;  %v1886_v9 = vpop.f32.mrb[6].mxu0  ;;  %v599_v11 = vmul.f32 1.442695, %v561_v2  ;;  %v593_v25 = vmul.f32 1.442695, %v558_v16  ;;  %v1904_v27 = vadd.f32 %v494_v4, %v317_v20 }
 0x127   : > { %v1888_v12 = vpop.f32.mrb[6].mxu1  ;;  %v1890_v13 = vpop.f32.mrb[7].mxu0  ;;  %1376 = vpow2.f32 %v595_v0  ;;  %v562_v26 = vsub.f32 0.0, %v530_v17  ;;  %v597_v34 = vmul.f32 1.442695, %v560_v22  ;;  %v1924_v42 = vadd.f32 %v423_v5, %v317_v20 }
 0x128   : > { %v1892_v14 = vpop.f32.mrb[7].mxu1  ;;  %1378 = vpow2.f32 %v599_v11  ;;  %v531_v35 = vand.u32 2147483647, %v1900_v23  ;;  %v533_v40 = vand.u32 2147483647, %v1904_v27  ;;  %v1945_v61 = vpop.permute.xlu1 %321  ;;  %v1954_v5 = vadd.f32 %v1884_v8, %v317_v20 }
 0x129   : > { %1380 = vpow2.f32 %v589_v18  ;;  %v601_v39 = vmul.f32 1.442695, %v562_v26  ;;  %2609 = vst [vmem:[#allocation8_spill] sm:$0xff] %v1924_v42  ;;  %v532_v0 = vand.u32 2147483647, %v1924_v42  ;;  %v1965_v17 = vadd.f32 %v1886_v9, %v1945_v61 }
 0x12a   : > { %v563_v57 = vsub.f32 0.0, %v531_v35  ;;  %v565_v63 = vsub.f32 0.0, %v533_v40  ;;  %2610 = vst [vmem:[#allocation9_spill] sm:$0xff] %v1954_v5  ;;  %v1972_v20 = vadd.f32 %v1888_v12, %v1945_v61  ;;  %v534_v40 = vand.u32 2147483647, %v1954_v5 }
 0x12b   : > { %v535_v26 = vand.u32 2147483647, %v1965_v17 }
 0x12c   : > { %v1896_v19 = vpop.f32.mrb[8].mxu0  ;;  %v603_v8 = vmul.f32 1.442695, %v563_v57  ;;  %v537_v35 = vand.u32 2147483647, %v1972_v20 }
 0x12d   : > { %v1898_v21 = vpop.f32.mrb[8].mxu1  ;;  %v1906_v28 = vpop.f32.mrb[9].mxu0 }
 0x12e   : > { %v1911_v31 = vpop.f32.mrb[9].mxu1  ;;  %v1913_v32 = vpop.f32.mrb[10].mxu0 }
 0x12f   : > { %v1902_v24 = vpop.eup %1372  ;;  %v1917_v36 = vpop.f32.mrb[10].mxu1 }
 0x130   : > { %v1908_v29 = vpop.eup %1374  ;;  %v651_v30 = vadd.f32 1.0, %v1902_v24  ;;  %v1919_v37 = vpop.f32.mrb[11].mxu0  ;;  %v654_v11 = vmul.f32 -0.5, %v1902_v24  ;;  %v657_v9 = vand.u32 2147483647, %v1902_v24 }
 0x131   : > { %v669_v33 = vadd.f32 1.0, %v1908_v29  ;;  %v1921_v38 = vpop.eup %1376  ;;  %v1926_v43 = vpop.f32.mrb[11].mxu1  ;;  %v672_v22 = vmul.f32 -0.5, %v1908_v29  ;;  %v675_v16 = vand.u32 2147483647, %v1908_v29 }
 0x132   : > { %1382 = vlog2.f32 %v651_v30  ;;  %v1930_v46 = vpop.eup %1378  ;;  %v687_v55 = vadd.f32 1.0, %v1921_v38  ;;  %v607_v30 = vmul.f32 1.442695, %v565_v63  ;;  %v655_v57 = vadd.f32 1.0, %v654_v11 }
 0x133   : > { %1384 = vpow2.f32 %v593_v25  ;;  %v705_v2 = vadd.f32 1.0, %v1930_v46  ;;  %v1967_v18 = vpop.eup %1380  ;;  %v690_v25 = vmul.f32 -0.5, %v1921_v38  ;;  %vm1989_vm1 = vcmp.lt.f32.partialorder %v657_v9, 0.0004427343 }
 0x134   : > { %1386 = vlog2.f32 %v669_v33  ;;  %v1928_v45 = vpop.f32.mrb[12].mxu0  ;;  %v564_v33 = vsub.f32 0.0, %v532_v0  ;;  %v660_v12 = vadd.f32 1.0, %v1967_v18  ;;  %v673_v0 = vadd.f32 1.0, %v672_v22 }
 0x135   : > { %v1935_v51 = vpop.f32.mrb[12].mxu1  ;;  %v1937_v53 = vpop.f32.mrb[13].mxu0  ;;  %1388 = vpow2.f32 %v597_v34  ;;  %v693_v49 = vand.u32 2147483647, %v1921_v38  ;;  %vm2000_vm2 = vcmp.lt.f32.partialorder %v675_v16, 0.0004427343 }
 0x136   : > { %v1941_v58 = vpop.f32.mrb[13].mxu1  ;;  %v1943_v60 = vpop.f32.mrb[14].mxu0  ;;  %1390 = vpow2.f32 %v601_v39  ;;  %v691_v39 = vadd.f32 1.0, %v690_v25  ;;  %v605_v54 = vmul.f32 1.442695, %v564_v33  ;;  %v674_v33 = vmul.f32 %v1908_v29, %v673_v0 }
 0x137   : > { %v1949_v1 = vpop.f32.mrb[14].mxu1  ;;  %1392 = vlog2.f32 %v687_v55  ;;  %v1956_v6 = vpop.f32.mrb[15].mxu0  ;;  %v663_v47 = vmul.f32 -0.5, %v1967_v18  ;;  %v711_v42 = vand.u32 2147483647, %v1930_v46  ;;  %v569_v9 = vsub.f32 0.0, %v537_v35 }
 0x138   : > { %v1958_v10 = vpop.f32.mrb[15].mxu1  ;;  %1394 = vlog2.f32 %v705_v2  ;;  %v708_v2 = vmul.f32 -0.5, %v1930_v46  ;;  %vm694_vm3 = vcmp.lt.f32.partialorder %v693_v49, 0.0004427343 }
 0x139   : > { %1396 = vpow2.f32 %v603_v8  ;;  %v656_v8 = vmul.f32 %v1902_v24, %v655_v57  ;;  %v692_v24 = vmul.f32 %v1921_v38, %v691_v39  ;;  %v2616_v39 = vmax.f32 %v1867_v48, 0.0 }
 0x13a   : > { %1398 = vpow2.f32 %v607_v30  ;;  %v709_v25 = vadd.f32 1.0, %v708_v2  ;;  %v666_v2 = vand.u32 2147483647, %v1967_v18  ;;  %vm712_vm4 = vcmp.lt.f32.partialorder %v711_v42, 0.0004427343 }
 0x13b   : > { %1400 = vlog2.f32 %v660_v12  ;;  %v566_v42 = vsub.f32 0.0, %v534_v40  ;;  %v615_v35 = vmul.f32 1.442695, %v569_v9 }
 0x13c   : > { %v1383_v34 = vpop.eup %1382  ;;  %v710_v11 = vmul.f32 %v1930_v46, %v709_v25  ;;  %vm2052_vm5 = vcmp.lt.f32.partialorder %v666_v2, 0.0004427343 }
 0x13d   : > { %v1980_v55 = vpop.eup %1384  ;;  %v653_v15 = vmul.f32 0.6931472, %v1383_v34 }
 0x13e   : > { %v1387_v63 = vpop.eup %1386  ;;  %v678_v4 = vadd.f32 1.0, %v1980_v55  ;;  %v681_v38 = vmul.f32 -0.5, %v1980_v55 }
 0x13f   : > { %v1987_v50 = vpop.eup %1388  ;;  %v671_v34 = vmul.f32 0.6931472, %v1387_v63  ;;  %v659_v22 = vsel %vm1989_vm1, %v656_v8, %v653_v15  ;;  %v2615_v15 = vmax.f32 %v1862_v41, 0.0 }
 0x140   : > { %v1996_v62 = vpop.eup %1390  ;;  %v696_v57 = vadd.f32 1.0, %v1987_v50  ;;  %1402 = vlog2.f32 %v678_v4  ;;  %v567_v4 = vsub.f32 0.0, %v535_v26  ;;  %v951_v26 = vmax.f32 %v1965_v17, 0.0 }
 0x141   : > { %v1393_v30 = vpop.eup %1392  ;;  %v714_v29 = vadd.f32 1.0, %v1996_v62  ;;  %v677_v16 = vsel %vm2000_vm2, %v674_v33, %v671_v34  ;;  %v2017_v8 = vadd.f32 %v2615_v15, %v659_v22  ;;  %v2618_v22 = vmax.f32 %v1873_v56, 0.0 }
 0x142   : > { %v689_v5 = vmul.f32 0.6931472, %v1393_v30  ;;  %v1395_v12 = vpop.eup %1394  ;;  %1404 = vlog2.f32 %v696_v57  ;;  %v611_v33 = vmul.f32 1.442695, %v567_v4  ;;  %v684_v57 = vand.u32 2147483647, %v1980_v55 }
 0x143   : > { %v707_v0 = vmul.f32 0.6931472, %v1395_v12  ;;  %v2024_v34 = vpop.eup %1396  ;;  %1406 = vlog2.f32 %v714_v29  ;;  %v609_v15 = vmul.f32 1.442695, %v566_v42 }
 0x144   : > { %v695_v63 = vsel %vm694_vm3, %v692_v24, %v689_v5  ;;  %v2617_v5 = vmax.f32 %v1864_v44, 0.0  ;;  %v2036_v48 = vpop.eup %1398  ;;  %v2039_v24 = vpop.permute.xlu0 %326  ;;  %v664_v44 = vadd.f32 1.0, %v663_v47  ;;  %1408 = vpow2.f32 %v605_v54 }
 0x145   : > { %v2022_v30 = vadd.f32 %v2616_v39, %v695_v63  ;;  %v713_v49 = vsel %vm712_vm4, %v710_v11, %v707_v0  ;;  %v1401_v56 = vpop.eup %1400  ;;  %v723_v29 = vadd.f32 1.0, %v2024_v34  ;;  %1410 = vpow2.f32 %v611_v33 }
 0x146   : > { %v2028_v46 = vadd.f32 %v2617_v5, %v677_v16  ;;  %v2034_v25 = vadd.f32 %v2618_v22, %v713_v49  ;;  %v699_v16 = vmul.f32 -0.5, %v1987_v50  ;;  %v2048_v40 = vadd.f32 %v1896_v19, %v2039_v24 }
 0x147   : > { %v682_v63 = vadd.f32 1.0, %v681_v38  ;;  %v717_v0 = vmul.f32 -0.5, %v1996_v62  ;;  %v741_v47 = vadd.f32 1.0, %v2036_v48  ;;  %1412 = vpow2.f32 %v615_v35 }
 0x148   : > { %v702_v54 = vand.u32 2147483647, %v1987_v50  ;;  %v662_v49 = vmul.f32 0.6931472, %v1401_v56  ;;  %v665_v4 = vmul.f32 %v1967_v18, %v664_v44  ;;  %v2060_v19 = vadd.f32 %v1890_v13, %v1945_v61 }
 0x149   : > { %v539_v38 = vand.u32 2147483647, %v2048_v40  ;;  %vm2063_vm6 = vcmp.lt.f32.partialorder %v684_v57, 0.0004427343  ;;  %v700_v2 = vadd.f32 1.0, %v699_v16  ;;  %1414 = vlog2.f32 %v723_v29 }
 0x14a   : > { %v1403_v39 = vpop.eup %1402  ;;  %v726_v5 = vmul.f32 -0.5, %v2024_v34  ;;  %v683_v22 = vmul.f32 %v1980_v55, %v682_v63  ;;  %v718_v42 = vadd.f32 1.0, %v717_v0  ;;  %v720_v33 = vand.u32 2147483647, %v1996_v62 }
 0x14b   : > { %1416 = vlog2.f32 %v741_v47  ;;  %v680_v35 = vmul.f32 0.6931472, %v1403_v39  ;;  %vm2070_vm7 = vcmp.lt.f32.partialorder %v702_v54, 0.0004427343  ;;  %v2076_v44 = vadd.f32 %v1892_v14, %v1945_v61 }
 0x14c   : > { %v1405_v18 = vpop.eup %1404  ;;  %1418 = vpow2.f32 %v609_v15  ;;  %v668_v56 = vsel %vm2052_vm5, %v665_v4, %v662_v49  ;;  %v744_v55 = vmul.f32 -0.5, %v2036_v48  ;;  %v536_v16 = vand.u32 2147483647, %v2060_v19 }
 0x14d   : > { %v1407_v57 = vpop.eup %1406  ;;  %v571_v29 = vsub.f32 0.0, %v539_v38  ;;  %v701_v63 = vmul.f32 %v1987_v50, %v700_v2  ;;  %v727_v0 = vadd.f32 1.0, %v726_v5  ;;  %v729_v47 = vand.u32 2147483647, %v2024_v34 }
 0x14e   : > { %v2086_v54 = vadd.f32 %v1898_v21, %v2039_v24  ;;  %v2088_v14 = vpop.eup %1408  ;;  %v698_v61 = vmul.f32 0.6931472, %v1405_v18  ;;  %v719_v11 = vmul.f32 %v1996_v62, %v718_v42  ;;  %vm2091_vm8 = vcmp.lt.f32.partialorder %v720_v33, 0.0004427343 }
 0x14f   : > { %v747_v39 = vand.u32 2147483647, %v2036_v48  ;;  %v2096_v49 = vpop.eup %1410  ;;  %v2627_v50 = vmax.f32 %v1870_v52, 0.0  ;;  %v686_v21 = vsel %vm2063_vm6, %v683_v22, %v680_v35  ;;  %v716_v38 = vmul.f32 0.6931472, %v1407_v57 }
 0x150   : > { %v538_v2 = vand.u32 2147483647, %v2076_v44  ;;  %v745_v62 = vadd.f32 1.0, %v744_v55  ;;  %v759_v42 = vadd.f32 1.0, %v2096_v49  ;;  %v568_v33 = vsub.f32 0.0, %v536_v16 }
 0x151   : > { %v2100_v4 = vadd.f32 %v2627_v50, %v668_v56  ;;  %v2105_v5 = vpop.eup %1412  ;;  %v619_v18 = vmul.f32 1.442695, %v571_v29  ;;  %v2109_v12 = vmul.f32 %v2024_v34, %v727_v0  ;;  %vm2111_vm9 = vcmp.lt.f32.partialorder %v729_v47, 0.0004427343 }
 0x152   : > { %v777_v9 = vadd.f32 1.0, %v2105_v5  ;;  %v541_v22 = vand.u32 2147483647, %v2086_v54  ;;  %v2630_v35 = vmax.f32 %v1875_v59, 0.0  ;;  %v704_v56 = vsel %vm2070_vm7, %v701_v63, %v698_v61  ;;  %v2130_v59 = vpop.permute.xlu1 %331 }
 0x153   : > { %vm2123_vm10 = vcmp.lt.f32.partialorder %v747_v39, 0.0004427343  ;;  %1420 = vlog2.f32 %v759_v42  ;;  %v1415_v34 = vpop.eup %1414  ;;  %v722_v16 = vsel %vm2091_vm8, %v719_v11, %v716_v38  ;;  %v732_v29 = vadd.f32 1.0, %v2088_v14 }
 0x154   : > { %v2119_v57 = vadd.f32 %v2630_v35, %v686_v21  ;;  %1422 = vlog2.f32 %v777_v9  ;;  %v570_v0 = vsub.f32 0.0, %v538_v2  ;;  %v746_v50 = vmul.f32 %v2036_v48, %v745_v62 }
 0x155   : > { %v1417_v47 = vpop.eup %1416  ;;  %v613_v13 = vmul.f32 1.442695, %v568_v33  ;;  %1424 = vpow2.f32 %v619_v18  ;;  %v2135_v63 = vadd.f32 %v1906_v28, %v2039_v24  ;;  %v762_v15 = vmul.f32 -0.5, %v2096_v49 }
 0x156   : > { %v2137_v61 = vpop.eup %1418  ;;  %v953_v11 = vmax.f32 %v1972_v20, 0.0  ;;  %v573_v39 = vsub.f32 0.0, %v541_v22  ;;  %v2143_v21 = vadd.f32 %v1913_v32, %v2130_v59  ;;  %v2633_v38 = vmax.f32 %v1879_v3, 0.0 }
 0x157   : > { %v2634_v2 = vmax.f32 %v1882_v7, 0.0  ;;  %v725_v28 = vmul.f32 0.6931472, %v1415_v34  ;;  %v780_v42 = vmul.f32 -0.5, %v2105_v5  ;;  %v743_v33 = vmul.f32 0.6931472, %v1417_v47 }
 0x158   : > { %v2147_v48 = vadd.f32 %v2633_v38, %v704_v56  ;;  %1426 = vlog2.f32 %v732_v29  ;;  %v617_v18 = vmul.f32 1.442695, %v570_v0  ;;  %v543_v20 = vand.u32 2147483647, %v2143_v21 }
 0x159   : > { %v2151_v62 = vadd.f32 %v2634_v2, %v722_v16  ;;  %v750_v9 = vadd.f32 1.0, %v2137_v61  ;;  %v765_v32 = vand.u32 2147483647, %v2096_v49  ;;  %1428 = vpow2.f32 %v613_v13 }
 0x15a   : > { %v540_v3 = vand.u32 2147483647, %v2135_v63  ;;  %v763_v22 = vadd.f32 1.0, %v762_v15  ;;  %v623_v35 = vmul.f32 1.442695, %v573_v39  ;;  %v575_v7 = vsub.f32 0.0, %v543_v20 }
 0x15b   : > { %v2160_v56 = vadd.f32 %v1917_v36, %v2130_v59  ;;  %v731_v34 = vsel %vm2111_vm9, %v2109_v12, %v725_v28  ;;  %v781_v16 = vadd.f32 1.0, %v780_v42  ;;  %v2168_v0 = vadd.f32 %v1911_v31, %v2039_v24 }
 0x15c   : > { %v749_v47 = vsel %vm2123_vm10, %v746_v50, %v743_v33  ;;  %v735_v13 = vmul.f32 -0.5, %v2088_v14  ;;  %v783_v15 = vand.u32 2147483647, %v2105_v5  ;;  %1430 = vpow2.f32 %v617_v18 }
 0x15d   : > { %v1421_v36 = vpop.eup %1420  ;;  %1432 = vlog2.f32 %v750_v9  ;;  %vm2174_vm11 = vcmp.lt.f32.partialorder %v765_v32, 0.0004427343  ;;  %v572_v12 = vsub.f32 0.0, %v540_v3  ;;  %v627_v39 = vmul.f32 1.442695, %v575_v7 }
 0x15e   : > { %v1423_v38 = vpop.eup %1422  ;;  %v761_v2 = vmul.f32 0.6931472, %v1421_v36  ;;  %v764_v31 = vmul.f32 %v2096_v49, %v763_v22  ;;  %1434 = vpow2.f32 %v623_v35  ;;  %v545_v24 = vand.u32 2147483647, %v2160_v56 }
 0x15f   : > { %v2180_v55 = vpop.eup %1424  ;;  %v779_v50 = vmul.f32 0.6931472, %v1423_v38  ;;  %v782_v28 = vmul.f32 %v2105_v5, %v781_v16  ;;  %v542_v42 = vand.u32 2147483647, %v2168_v0  ;;  %1436 = vpow2.f32 %v627_v39 }
 0x160   : > { %v2637_v33 = vmax.f32 %v1900_v23, 0.0  ;;  %v753_v20 = vmul.f32 -0.5, %v2137_v61  ;;  %v767_v49 = vsel %vm2174_vm11, %v764_v31, %v761_v2  ;;  %vm784_vm12 = vcmp.lt.f32.partialorder %v783_v15, 0.0004427343 }
 0x161   : > { %v738_v9 = vand.u32 2147483647, %v2088_v14  ;;  %v2194_v32 = vadd.f32 %v951_v26, %v767_v49  ;;  %v785_v5 = vsel %vm784_vm12, %v782_v28, %v779_v50  ;;  %v795_v3 = vadd.f32 1.0, %v2180_v55 }
 0x162   : > { %v2186_v18 = vadd.f32 %v2637_v33, %v731_v34  ;;  %v1427_v22 = vpop.eup %1426  ;;  %v2639_v23 = vmax.f32 %v1904_v27, 0.0  ;;  %v736_v7 = vadd.f32 1.0, %v735_v13  ;;  %v2201_v34 = vadd.f32 %v953_v11, %v785_v5 }
 0x163   : > { %v577_v16 = vsub.f32 0.0, %v545_v24  ;;  %v2203_v36 = vpop.eup %1428  ;;  %v621_v17 = vmul.f32 1.442695, %v572_v12  ;;  %v574_v26 = vsub.f32 0.0, %v542_v42  ;;  %v2209_v52 = vadd.f32 %v1919_v37, %v2130_v59 }
 0x164   : > { %2638 = vst [vmem:[#allocation10_spill] sm:$0xff] %v2186_v18  ;;  %v2199_v35 = vadd.f32 %v2639_v23, %v749_v47  ;;  %2641 = vst [vmem:[#allocation12_spill] sm:$0xff] %v2201_v34  ;;  %v754_v39 = vadd.f32 1.0, %v753_v20  ;;  %v756_v27 = vand.u32 2147483647, %v2137_v61  ;;  %1438 = vlog2.f32 %v795_v3  ;;  %v337_v47 = vpop.permute.xlu0 %336 }
 0x165   : > { %vm2215_vm13 = vcmp.lt.f32.partialorder %v738_v9, 0.0004427343  ;;  %v2223_v37 = vmul.f32 0.6931472, %v1427_v22  ;;  %v2226_v31 = vmul.f32 %v2088_v14, %v736_v7  ;;  %v631_v50 = vmul.f32 1.442695, %v577_v16 }
 0x166   : > { %2640 = vst [vmem:[#allocation11_spill] sm:$0xff] %v2199_v35  ;;  %v2221_v2 = vpop.eup %1430  ;;  %v771_v42 = vmul.f32 -0.5, %v2203_v36  ;;  %1440 = vpow2.f32 %v621_v17  ;;  %v625_v33 = vmul.f32 1.442695, %v574_v26  ;;  %v544_v20 = vand.u32 2147483647, %v2209_v52 }
 0x167   : > { %v1433_v28 = vpop.eup %1432  ;;  %v2234_v9 = vmul.f32 %v2137_v61, %v754_v39  ;;  %vm2236_vm14 = vcmp.lt.f32.partialorder %v756_v27, 0.0004427343  ;;  %v2243_v3 = vadd.f32 %v1926_v43, %v2130_v59  ;;  %v768_v23 = vadd.f32 1.0, %v2203_v36 }
 0x168   : > { %v2231_v49 = vpop.eup %1434  ;;  %1442 = vpow2.f32 %v631_v50  ;;  %v786_v17 = vadd.f32 1.0, %v2221_v2  ;;  %v772_v59 = vadd.f32 1.0, %v771_v42  ;;  %v576_v27 = vsub.f32 0.0, %v544_v20 }
 0x169   : > { %v2245_v22 = vpop.eup %1436  ;;  %v813_v39 = vadd.f32 1.0, %v2231_v49  ;;  %1444 = vpow2.f32 %v625_v33  ;;  %v2258_v15 = vmul.f32 0.6931472, %v1433_v28  ;;  %v798_v50 = vmul.f32 -0.5, %v2180_v55 }
 0x16a   : > { %v831_v26 = vadd.f32 1.0, %v2245_v22  ;;  %v546_v14 = vand.u32 2147483647, %v2243_v3  ;;  %v789_v24 = vmul.f32 -0.5, %v2221_v2  ;;  %v2265_v11 = vadd.f32 %v1928_v45, %v337_v47 }
 0x16b   : > { %v629_v42 = vmul.f32 1.442695, %v576_v27  ;;  %v2268_v20 = vadd.f32 %v1935_v51, %v337_v47  ;;  %v2271_v41 = vmul.f32 %v2203_v36, %v772_v59  ;;  %v801_v29 = vand.u32 2147483647, %v2180_v55 }
 0x16c   : > { %1446 = vlog2.f32 %v831_v26  ;;  %2646 = vst [vmem:[#allocation13_spill] sm:$0xff] %v2265_v11  ;;  %v578_v33 = vsub.f32 0.0, %v546_v14  ;;  %v547_v26 = vand.u32 2147483647, %v2265_v11  ;;  %v790_v51 = vadd.f32 1.0, %v789_v24  ;;  %v2290_v24 = vpop.permute.xlu1 %341 }
 0x16d   : > { %1448 = vlog2.f32 %v768_v23  ;;  %2647 = vst [vmem:[#allocation14_spill] sm:$0xff] %v2268_v20  ;;  %v834_v23 = vmul.f32 -0.5, %v2245_v22  ;;  %v816_v38 = vmul.f32 -0.5, %v2231_v49  ;;  %v819_v61 = vand.u32 2147483647, %v2231_v49 }
 0x16e   : > { %1450 = vlog2.f32 %v786_v17  ;;  %v1439_v28 = vpop.eup %1438  ;;  %v799_v17 = vadd.f32 1.0, %v798_v50  ;;  %v633_v14 = vmul.f32 1.442695, %v578_v33  ;;  %v579_v59 = vsub.f32 0.0, %v547_v26 }
 0x16f   : > { %1452 = vlog2.f32 %v813_v39  ;;  %v549_v39 = vand.u32 2147483647, %v2268_v20  ;;  %v797_v43 = vmul.f32 0.6931472, %v1439_v28  ;;  %v835_v45 = vadd.f32 1.0, %v834_v23 }
 0x170   : > { %1454 = vpow2.f32 %v629_v42  ;;  %v2279_v27 = vpop.eup %1440  ;;  %v635_v50 = vmul.f32 1.442695, %v579_v59  ;;  %v2288_v33 = vadd.f32 %v1937_v53, %v337_v47  ;;  %v800_v26 = vmul.f32 %v2180_v55, %v799_v17 }
 0x171   : > { %1456 = vpow2.f32 %v633_v14  ;;  %v581_v42 = vsub.f32 0.0, %v549_v39  ;;  %v804_v12 = vadd.f32 1.0, %v2279_v27  ;;  %v837_v28 = vand.u32 2147483647, %v2245_v22 }
 0x172   : > { %v2285_v16 = vpop.eup %1442  ;;  %2648 = vst [vmem:[#allocation15_spill] sm:$0xff] %v2288_v33  ;;  %v2299_v14 = vmul.f32 %v2221_v2, %v790_v51  ;;  %vm2301_vm15 = vcmp.lt.f32.partialorder %v801_v29, 0.0004427343  ;;  %1458 = vpow2.f32 %v635_v50  ;;  %v2307_v53 = vadd.f32 %v1943_v60, %v2290_v24 }
 0x173   : > { %v849_v7 = vadd.f32 1.0, %v2285_v16  ;;  %v2296_v20 = vpop.eup %1444  ;;  %v803_v17 = vsel %vm2301_vm15, %v800_v26, %v797_v43  ;;  %v817_v59 = vadd.f32 1.0, %v816_v38  ;;  %v2312_v39 = vadd.f32 %v1941_v58, %v337_v47 }
 0x174   : > { %2651 = vst [vmem:[#allocation16_spill] sm:$0xff] %v2307_v53  ;;  %vm2314_vm0 = vcmp.lt.f32.partialorder %v819_v61, 0.0004427343  ;;  %v836_v50 = vmul.f32 %v2245_v22, %v835_v45  ;;  %v639_v35 = vmul.f32 1.442695, %v581_v42  ;;  %v807_v43 = vmul.f32 -0.5, %v2279_v27 }
 0x175   : > { %1460 = vlog2.f32 %v849_v7  ;;  %2652 = vst [vmem:[#allocation17_spill] sm:$0xff] %v2312_v39  ;;  %v548_v60 = vand.u32 2147483647, %v2288_v33  ;;  %v810_v38 = vand.u32 2147483647, %v2279_v27  ;;  %v822_v47 = vadd.f32 1.0, %v2296_v20 }
 0x176   : > { %v1447_v55 = vpop.eup %1446  ;;  %1462 = vlog2.f32 %v804_v12  ;;  %vm838_vm1 = vcmp.lt.f32.partialorder %v837_v28, 0.0004427343  ;;  %v852_v61 = vmul.f32 -0.5, %v2285_v16  ;;  %v551_v26 = vand.u32 2147483647, %v2307_v53 }
 0x177   : > { %v1449_v51 = vpop.eup %1448  ;;  %v833_v11 = vmul.f32 0.6931472, %v1447_v55  ;;  %v2655_v22 = vand.u32 2147483647, %v2203_v36  ;;  %v2658_v12 = vmax.f32 %v2048_v40, 0.0  ;;  %v2659_v28 = vmax.f32 %v2143_v21, 0.0 }
 0x178   : > { %v1451_v34 = vpop.eup %1450  ;;  %1464 = vpow2.f32 %v639_v35  ;;  %v580_v33 = vsub.f32 0.0, %v548_v60  ;;  %vm2390_vm5 = vcmp.lt.f32.partialorder %v810_v38, 0.0004427343  ;;  %v1005_v38 = vpack.c.bf16 %v2147_v48, %v2100_v4 }
 0x179   : > { %v1453_v58 = vpop.eup %1452  ;;  %v839_v7 = vsel %vm838_vm1, %v836_v50, %v833_v11  ;;  %vm2329_vm2 = vcmp.lt.f32.partialorder %v2655_v22, 0.0004427343  ;;  %v2335_v42 = vadd.f32 %v2658_v12, %v803_v17  ;;  %v550_v11 = vand.u32 2147483647, %v2312_v39 }
 0x17a   : > { %v2325_v23 = vpop.eup %1454  ;;  %v2339_v55 = vadd.f32 %v2659_v28, %v839_v7  ;;  %v2344_v50 = vadd.f32 %v1949_v1, %v2290_v24  ;;  %v815_v40 = vmul.f32 0.6931472, %v1453_v58  ;;  %v583_v17 = vsub.f32 0.0, %v551_v26  ;;  %1030 = vmatprep.subr.bf16.mxu0 %v1005_v38 }
 0x17b   : > { %v840_v36 = vadd.f32 1.0, %v2325_v23  ;;  %v2348_v53 = vpop.eup %1456  ;;  %v818_v12 = vmul.f32 %v2231_v49, %v817_v59  ;;  %v853_v28 = vadd.f32 1.0, %v852_v61  ;;  %v855_v22 = vand.u32 2147483647, %v2285_v16 }
 0x17c   : > { %2660 = vst [vmem:[#allocation18_spill] sm:$0xff] %v2344_v50  ;;  %v553_v7 = vand.u32 2147483647, %v2344_v50  ;;  %v858_v1 = vadd.f32 1.0, %v2348_v53  ;;  %v582_v35 = vsub.f32 0.0, %v550_v11  ;;  %v2356_v39 = vpop.eup %1458  ;;  %v962_v61 = vmax.f32 %v2243_v3, 0.0 }
 0x17d   : > { %1466 = vlog2.f32 %v840_v36  ;;  %v643_v60 = vmul.f32 1.442695, %v583_v17  ;;  %v770_v58 = vmul.f32 0.6931472, %v1449_v51  ;;  %v637_v18 = vmul.f32 1.442695, %v580_v33 }
 0x17e   : > { %1468 = vlog2.f32 %v822_v47  ;;  %v585_v21 = vsub.f32 0.0, %v553_v7  ;;  %v2661_v50 = vand.u32 2147483647, %v2221_v2  ;;  %v821_v59 = vsel %vm2314_vm0, %v818_v12, %v815_v40 }
 0x17f   : > { %1470 = vlog2.f32 %v858_v1  ;;  %v1461_v26 = vpop.eup %1460  ;;  %v808_v47 = vadd.f32 1.0, %v807_v43  ;;  %v2369_v11 = vadd.f32 %v1956_v6, %v2290_v24  ;;  %v854_v33 = vmul.f32 %v2285_v16, %v853_v28 }
 0x180   : > { %vm2360_vm3 = vcmp.lt.f32.partialorder %v2661_v50, 0.0004427343  ;;  %v851_v51 = vmul.f32 0.6931472, %v1461_v26  ;;  %1472 = vpow2.f32 %v643_v60  ;;  %v647_v36 = vmul.f32 1.442695, %v585_v21  ;;  %v1463_v2 = vpop.eup %1462 }
 0x181   : > { %vm856_vm4 = vcmp.lt.f32.partialorder %v855_v22, 0.0004427343  ;;  %v843_v50 = vmul.f32 -0.5, %v2325_v23  ;;  %v861_v17 = vmul.f32 -0.5, %v2348_v53  ;;  %v641_v29 = vmul.f32 1.442695, %v582_v35 }
 0x182   : > { %v776_v43 = vsel %vm2329_vm2, %v2271_v41, %v770_v58  ;;  %v857_v40 = vsel %vm856_vm4, %v854_v33, %v851_v51  ;;  %v867_v6 = vadd.f32 1.0, %v2356_v39  ;;  %1474 = vpow2.f32 %v637_v18  ;;  %v2388_v1 = vpop.eup %1464 }
 0x183   : > { %v2664_v7 = vmax.f32 %v2086_v54, 0.0  ;;  %v825_v21 = vmul.f32 -0.5, %v2296_v20  ;;  %v2665_v22 = vmax.f32 %v2160_v56, 0.0  ;;  %v552_v28 = vand.u32 2147483647, %v2369_v11 }
 0x184   : > { %v788_v45 = vmul.f32 0.6931472, %v1451_v34  ;;  %v828_v18 = vand.u32 2147483647, %v2296_v20  ;;  %v846_v54 = vand.u32 2147483647, %v2325_v23  ;;  %1476 = vpow2.f32 %v647_v36 }
 0x185   : > { %v2380_v16 = vadd.f32 %v2664_v7, %v821_v59  ;;  %v2385_v12 = vadd.f32 %v2665_v22, %v857_v40  ;;  %v844_v56 = vadd.f32 1.0, %v843_v50  ;;  %v862_v60 = vadd.f32 1.0, %v861_v17 }
 0x186   : > { %1478 = vpow2.f32 %v641_v29  ;;  %v584_v26 = vsub.f32 0.0, %v552_v28  ;;  %v2400_v34 = vadd.f32 %v1958_v10, %v2290_v24  ;;  %v2668_v51 = vmax.f32 %v2060_v19, 0.0 }
 0x187   : > { %v1014_v35 = vpack.c.bf16 %v2385_v12, %v2380_v16  ;;  %v1467_v58 = vpop.eup %1466  ;;  %1480 = vlog2.f32 %v867_v6  ;;  %v864_v40 = vand.u32 2147483647, %v2348_v53  ;;  %v885_v50 = vadd.f32 1.0, %v2388_v1  ;;  %v2698_v12 = vld [vmem:[#allocation18_spill] sm:$0xff] }
 0x188   : > { %v1469_v59 = vpop.eup %1468  ;;  %v984_v33 = vadd.f32 %v2668_v51, %v776_v43  ;;  %v842_v36 = vmul.f32 0.6931472, %v1467_v58  ;;  %v794_v29 = vsel %vm2360_vm3, %v2299_v14, %v788_v45  ;;  %v809_v10 = vmul.f32 %v2279_v27, %v808_v47  ;;  %v2678_v58 = vld [vmem:[#allocation8_spill] sm:$0xff] }
 0x189   : > { %v1471_v17 = vpop.eup %1470  ;;  %v826_v24 = vadd.f32 1.0, %v825_v21  ;;  %v645_v6 = vmul.f32 1.442695, %v584_v26  ;;  %v806_v4 = vmul.f32 0.6931472, %v1463_v2  ;;  %v845_v48 = vmul.f32 %v2325_v23, %v844_v56 }
 0x18a   : > { %v860_v19 = vmul.f32 0.6931472, %v1471_v17  ;;  %v554_v43 = vand.u32 2147483647, %v2400_v34  ;;  %v2669_v7 = vpack.c.bf16 %v2022_v30, %v2017_v8  ;;  %v2417_v22 = vpop.eup %1472  ;;  %v824_v28 = vmul.f32 0.6931472, %v1469_v59 }
 0x18b   : > { %vm2419_vm6 = vcmp.lt.f32.partialorder %v828_v18, 0.0004427343  ;;  %vm2423_vm7 = vcmp.lt.f32.partialorder %v846_v54, 0.0004427343  ;;  %v863_v23 = vmul.f32 %v2348_v53, %v862_v60  ;;  %vm2430_vm8 = vcmp.lt.f32.partialorder %v864_v40, 0.0004427343 }
 0x18c   : > { %1031 = vmatpush1.bf16.msra.mxu0 %v2669_v7  ;;  %v848_v49 = vsel %vm2423_vm7, %v845_v48, %v842_v36  ;;  %1482 = vlog2.f32 %v885_v50  ;;  %v903_v8 = vadd.f32 1.0, %v2417_v22  ;;  %v2435_v30 = vpop.eup %1474  ;;  %v2676_v2 = vmax.f32 %v2076_v44, 0.0 }
 0x18d   : > { %v827_v45 = vmul.f32 %v2296_v20, %v826_v24  ;;  %v866_v53 = vsel %vm2430_vm8, %v863_v23, %v860_v19  ;;  %1484 = vpow2.f32 %v645_v6  ;;  %v812_v18 = vsel %vm2390_vm5, %v809_v10, %v806_v4  ;;  %v2689_v23 = vld [vmem:[#allocation12_spill] sm:$0xff] }
 0x18e   : > { %v986_v21 = vadd.f32 %v2676_v2, %v794_v29  ;;  %v870_v54 = vmul.f32 -0.5, %v2356_v39  ;;  %1486 = vlog2.f32 %v903_v8  ;;  %v586_v56 = vsub.f32 0.0, %v554_v43  ;;  %v2445_v60 = vpop.eup %1476 }
 0x18f   : > { %v2677_v44 = vsel %vm2215_vm13, %v2226_v31, %v2223_v37  ;;  %v2679_v20 = vmax.f32 %v2678_v58, 0.0  ;;  %v830_v38 = vsel %vm2419_vm6, %v827_v45, %v824_v28  ;;  %v2680_v41 = vmax.f32 %v2209_v52, 0.0  ;;  %v2682_v37 = vld [vmem:[#allocation9_spill] sm:$0xff] }
 0x190   : > { %v1007_v51 = vpack.c.bf16 %v2151_v62, %v2119_v57  ;;  %v2460_v36 = vpop.eup %1478  ;;  %v2681_v13 = vsel %vm2236_vm14, %v2234_v9, %v2258_v15  ;;  %v2683_v31 = vmax.f32 %v2682_v37, 0.0  ;;  %v994_v50 = vadd.f32 %v962_v61, %v866_v53 }
 0x191   : > { %v980_v26 = vadd.f32 %v2679_v20, %v2677_v44  ;;  %v992_v59 = vadd.f32 %v2680_v41, %v848_v49  ;;  %v876_v17 = vadd.f32 1.0, %v2435_v30  ;;  %v921_v52 = vadd.f32 1.0, %v2445_v60  ;;  %v1481_v29 = vpop.eup %1480  ;;  %v2690_v49 = vld [vmem:[#allocation11_spill] sm:$0xff] }
 0x192   : > { %v982_v40 = vadd.f32 %v2683_v31, %v2681_v13  ;;  %v2684_v57 = vmax.f32 %v2135_v63, 0.0  ;;  %v906_v10 = vmul.f32 -0.5, %v2417_v22  ;;  %v649_v5 = vmul.f32 1.442695, %v586_v56  ;;  %1071 = vmatprep.subr.bf16.mxu1 %v1007_v51 }
 0x193   : > { %v1009_v24 = vpack.c.bf16 %v984_v33, %v980_v26  ;;  %v2685_v15 = vmax.f32 %v2168_v0, 0.0  ;;  %v871_v6 = vadd.f32 1.0, %v870_v54  ;;  %1488 = vlog2.f32 %v921_v52  ;;  %v2687_v0 = vld [vmem:[#allocation10_spill] sm:$0xff] }
 0x194   : > { %v988_v62 = vadd.f32 %v2684_v57, %v812_v18  ;;  %v2686_v3 = vpack.c.bf16 %v2034_v25, %v2028_v46  ;;  %v1011_v61 = vpack.c.bf16 %v986_v21, %v982_v40  ;;  %v873_v4 = vand.u32 2147483647, %v2356_v39 }
 0x195   : > { %v990_v9 = vadd.f32 %v2685_v15, %v830_v38  ;;  %v888_v63 = vmul.f32 -0.5, %v2388_v1  ;;  %1490 = vpow2.f32 %v649_v5  ;;  %1032 = vmatprep.subr.bf16.mxu0 %v1009_v24  ;;  %v869_v19 = vmul.f32 0.6931472, %v1481_v29  ;;  %v2696_v38 = vld [vmem:[#allocation16_spill] sm:$0xff] }
 0x196   : > { %1072 = vmatpush1.bf16.msra.mxu1 %v2686_v3  ;;  %v1013_v48 = vpack.c.bf16 %v992_v59, %v988_v62  ;;  %1492 = vlog2.f32 %v876_v17  ;;  %v894_v33 = vadd.f32 1.0, %v2460_v36  ;;  %v2688_v43 = vpack.c.bf16 %v2194_v32, %v2687_v0  ;;  %v1483_v28 = vpop.eup %1482  ;;  %v2694_v32 = vld [vmem:[#allocation13_spill] sm:$0xff] }
 0x197   : > { %1073 = vmatprep.subr.bf16.mxu1 %v1011_v61  ;;  %v1015_v7 = vpack.c.bf16 %v994_v50, %v990_v9  ;;  %v907_v46 = vadd.f32 1.0, %v906_v10  ;;  %v924_v25 = vmul.f32 -0.5, %v2445_v60  ;;  %v872_v14 = vmul.f32 %v2356_v39, %v871_v6  ;;  %v1485_v8 = vpop.eup %1484 }
 0x198   : > { %1033 = vmatpush1.bf16.msra.mxu0 %v2688_v43  ;;  %v909_v27 = vand.u32 2147483647, %v2417_v22  ;;  %v2691_v47 = vpack.c.bf16 %v2689_v23, %v2690_v49  ;;  %vm2493_vm9 = vcmp.lt.f32.partialorder %v873_v4, 0.0004427343  ;;  %v963_v21 = vmax.f32 %v2694_v32, 0.0  ;;  %v1487_v53 = vpop.eup %1486 }
 0x199   : > { %1034 = vmatprep.subr.bf16.mxu0 %v1013_v48  ;;  %v889_v45 = vadd.f32 1.0, %v888_v63  ;;  %v875_v18 = vsel %vm2493_vm9, %v872_v14, %v869_v19  ;;  %v891_v39 = vand.u32 2147483647, %v2388_v1  ;;  %1494 = vlog2.f32 %v894_v33 }
 0x19a   : > { %1074 = vmatpush1.bf16.msra.mxu1 %v2691_v47  ;;  %v912_v54 = vadd.f32 1.0, %v1485_v8  ;;  %v2695_v56 = vpack.c.bf16 %v2339_v55, %v2335_v42  ;;  %v887_v44 = vmul.f32 0.6931472, %v1483_v28  ;;  %v905_v58 = vmul.f32 0.6931472, %v1487_v53 }
 0x19b   : > { %1075 = vmatprep.subr.bf16.mxu1 %v1015_v7  ;;  %v908_v20 = vmul.f32 %v2417_v22, %v907_v46  ;;  %v925_v26 = vadd.f32 1.0, %v924_v25  ;;  %vm910_vm10 = vcmp.lt.f32.partialorder %v909_v27, 0.0004427343  ;;  %v967_v41 = vmax.f32 %v2696_v38, 0.0  ;;  %v2697_v22 = vld [vmem:[#allocation14_spill] sm:$0xff]  ;;  %v2699_v25 = vld [vmem:[#allocation15_spill] sm:$0xff]  ;;  %v1024_v38 = vpop.permute.xlu0 %1023 }
 0x19c   : > { %1035 = vmatpush1.bf16.msra.mxu0 %v2695_v56  ;;  %v927_v59 = vand.u32 2147483647, %v2445_v60  ;;  %1496 = vlog2.f32 %v912_v54  ;;  %v890_v51 = vmul.f32 %v2388_v1, %v889_v45  ;;  %v879_v42 = vmul.f32 -0.5, %v2435_v30  ;;  %v2700_v54 = vld [vmem:[#allocation17_spill] sm:$0xff] }
 0x19d   : > { %v911_v55 = vsel %vm910_vm10, %v908_v20, %v905_v58  ;;  %v1489_v13 = vpop.eup %1488  ;;  %v995_v37 = vadd.f32 %v963_v21, %v875_v18  ;;  %vm892_vm11 = vcmp.lt.f32.partialorder %v891_v39, 0.0004427343  ;;  %v965_v31 = vmax.f32 %v2697_v22, 0.0  ;;  %v1003_v58 = vld [vmem:[%s2588_s3] sm:$0x3] }
 0x19e   : > { %1076 = vmatpush1.bf16.msra.mxu1 %v1014_v35  ;;  %v999_v40 = vadd.f32 %v967_v41, %v911_v55  ;;  %v893_v17 = vsel %vm892_vm11, %v890_v51, %v887_v44  ;;  %v923_v52 = vmul.f32 0.6931472, %v1489_v13  ;;  %v926_v29 = vmul.f32 %v2445_v60, %v925_v26 }
 0x19f   : > { %v1491_v50 = vpop.eup %1490  ;;  %v915_v57 = vmul.f32 -0.5, %v1485_v8  ;;  %vm928_vm12 = vcmp.lt.f32.partialorder %v927_v59, 0.0004427343  ;;  %v969_v1 = vmax.f32 %v2698_v12, 0.0  ;;  %v880_v10 = vadd.f32 1.0, %v879_v42 }
 0x1a0   : > { %v1493_v62 = vpop.eup %1492  ;;  %v1016_v16 = vpack.c.bf16 %v999_v40, %v995_v37  ;;  %v930_v35 = vadd.f32 1.0, %v1491_v50  ;;  %v929_v5 = vsel %vm928_vm12, %v926_v29, %v923_v52  ;;  %v997_v24 = vadd.f32 %v965_v31, %v893_v17 }
 0x1a1   : > { %v882_v15 = vand.u32 2147483647, %v2435_v30  ;;  %v1001_v9 = vadd.f32 %v969_v1, %v929_v5  ;;  %v878_v6 = vmul.f32 0.6931472, %v1493_v62  ;;  %v897_v3 = vmul.f32 -0.5, %v2460_v36 }
 0x1a2   : > { %1498 = vlog2.f32 %v930_v35  ;;  %v916_v61 = vadd.f32 1.0, %v915_v57  ;;  %v918_v63 = vand.u32 2147483647, %v1485_v8  ;;  %v881_v48 = vmul.f32 %v2435_v30, %v880_v10 }
 0x1a3   : > { %v1495_v4 = vpop.eup %1494  ;;  %v1018_v60 = vpack.c.bf16 %v1001_v9, %v997_v24  ;;  %v933_v19 = vmul.f32 -0.5, %v1491_v50  ;;  %vm883_vm13 = vcmp.lt.f32.partialorder %v882_v15, 0.0004427343  ;;  %v898_v43 = vadd.f32 1.0, %v897_v3 }
 0x1a4   : > { %v884_v0 = vsel %vm883_vm13, %v881_v48, %v878_v6  ;;  %v917_v46 = vmul.f32 %v1485_v8, %v916_v61  ;;  %v964_v28 = vmax.f32 %v2699_v25, 0.0  ;;  %v900_v14 = vand.u32 2147483647, %v2460_v36 }
 0x1a5   : > { %vm919_vm14 = vcmp.lt.f32.partialorder %v918_v63, 0.0004427343  ;;  %v968_v27 = vmax.f32 %v2369_v11, 0.0  ;;  %v896_v23 = vmul.f32 0.6931472, %v1495_v4  ;;  %v934_v47 = vadd.f32 1.0, %v933_v19 }
 0x1a6   : > { %v1497_v33 = vpop.eup %1496  ;;  %v996_v2 = vadd.f32 %v964_v28, %v884_v0  ;;  %v936_v30 = vand.u32 2147483647, %v1491_v50  ;;  %v899_v21 = vmul.f32 %v2460_v36, %v898_v43  ;;  %vm901_vm15 = vcmp.lt.f32.partialorder %v900_v14, 0.0004427343 }
 0x1a7   : > { %v914_v7 = vmul.f32 0.6931472, %v1497_v33  ;;  %v935_v39 = vmul.f32 %v1491_v50, %v934_v47  ;;  %v966_v56 = vmax.f32 %v2700_v54, 0.0  ;;  %v970_v44 = vmax.f32 %v2400_v34, 0.0 }
 0x1a8   : > { %v902_v18 = vsel %vm901_vm15, %v899_v21, %v896_v23  ;;  %vm937_vm0 = vcmp.lt.f32.partialorder %v936_v30, 0.0004427343  ;;  %vm1026_vm1 = vcmask 523264   ;;  %v1112_v5 = vlaneseq }
 0x1a9   : > { %v920_v49 = vsel %vm919_vm14, %v917_v46, %v914_v7  ;;  %v998_v36 = vadd.f32 %v966_v56, %v902_v18 }
 0x1aa   : > { %v1000_v32 = vadd.f32 %v968_v27, %v920_v49  ;;  %v1113_v9 = vshrl.u32 %v1112_v5, 7 }
 0x1ac   : > { %v1499_v45 = vpop.eup %1498  ;;  %v1017_v53 = vpack.c.bf16 %v1000_v32, %v996_v2  ;;  %vm1146_vm2 = vcmp.eq.s32.totalorder %v1113_v9, 0 }
 0x1ad   : > { %v932_v8 = vmul.f32 0.6931472, %v1499_v45 }
 0x1ae   : > { %1036 = vmatprep.subr.bf16.mxu0 %v1017_v53 }
 0x1af   : > { %v938_v11 = vsel %vm937_vm0, %v935_v39, %v932_v8  ;;  %1037 = vmatpush1.bf16.msra.mxu0 %v1016_v16 }
 0x1b0   : > { %v1002_v20 = vadd.f32 %v970_v44, %v938_v11 }
 0x1b2   : > { %v1019_v26 = vpack.c.bf16 %v1002_v20, %v998_v36  ;;  %1284 = vmatmul.mubr.msk.bf16.vlgmr.msra.gmra.mrb[16].mxu0 %vm1026_vm1, %v1003_v58 }
 0x1b4   : > { %1077 = vmatprep.subr.bf16.mxu1 %v1019_v26 }
 0x1b5   : > { %1078 = vmatpush1.bf16.msra.mxu1 %v1018_v60 }
 0x1b8   : > { %1285 = vmatmul.mubr.msk.bf16.vlgmr.msra.gmra.mrb[16].mxu1 %vm1026_vm1, %v1003_v58 }
 0x285   : > { %v1064_v41 = vpop.f32.mrb[16].mxu0 }
 0x286   : > { %v1065_v59 = vadd.f32 %v1064_v41, %v1024_v38  ;;  %v1066_v51 = vpop.f32.mrb[17].mxu0 }
 0x287   : > { %v1067_v34 = vadd.f32 %v1066_v51, %v1024_v38  ;;  %v1068_v42 = vpop.f32.mrb[18].mxu0 }
 0x288   : > { %v1286_v55 = vmul.f32 -1.442695, %v1065_v59  ;;  %v1069_v13 = vpop.f32.mrb[19].mxu0 }
 0x289   : > { %v1287_v37 = vmul.f32 -1.442695, %v1067_v34 }
 0x28a   : > { %1500 = vpow2.f32 %v1286_v55 }
 0x28b   : > { %v1105_v22 = vpop.f32.mrb[16].mxu1  ;;  %1502 = vpow2.f32 %v1287_v37 }
 0x28c   : > { %v1106_v31 = vadd.f32 %v1105_v22, %v1024_v38  ;;  %v1107_v40 = vpop.f32.mrb[17].mxu1 }
 0x28d   : > { %v1108_v50 = vadd.f32 %v1107_v40, %v1024_v38  ;;  %v1109_v17 = vpop.f32.mrb[18].mxu1 }
 0x28e   : > { %v1288_v52 = vmul.f32 -1.442695, %v1106_v31  ;;  %v1110_v29 = vpop.f32.mrb[19].mxu1 }
 0x28f   : > { %v1289_v57 = vmul.f32 -1.442695, %v1108_v50 }
 0x290   : > { %1504 = vpow2.f32 %v1288_v52 }
 0x291   : > { %1506 = vpow2.f32 %v1289_v57 }
 0x294   : > { %v1501_v62 = vpop.eup %1500 }
 0x295   : > { %v1503_v16 = vpop.eup %1502  ;;  %v1126_v12 = vadd.f32 1.0, %v1501_v62 }
 0x296   : > { %v1127_v1 = vadd.f32 1.0, %v1503_v16 }
 0x297   : > { %1508 = vrcp.f32 %v1126_v12 }
 0x298   : > { %1510 = vrcp.f32 %v1127_v1 }
 0x29a   : > { %v1505_v35 = vpop.eup %1504 }
 0x29b   : > { %v1507_v10 = vpop.eup %1506  ;;  %v1128_v24 = vadd.f32 1.0, %v1505_v35 }
 0x29c   : > { %v1129_v15 = vadd.f32 1.0, %v1507_v10 }
 0x29d   : > { %1512 = vrcp.f32 %v1128_v24 }
 0x29e   : > { %1514 = vrcp.f32 %v1129_v15 }
 0x2a1   : > { %v1509_v6 = vpop.eup %1508 }
 0x2a2   : > { %v1511_v3 = vpop.eup %1510  ;;  %v1138_v61 = vmul.f32 1.002, %v1509_v6 }
 0x2a3   : > { %v1139_v4 = vmul.f32 1.002, %v1511_v3 }
 0x2a4   : > { %v1290_v60 = vadd.f32 -0.001, %v1138_v61 }
 0x2a5   : > { %v1291_v63 = vadd.f32 -0.001, %v1139_v4 }
 0x2a6   : > { %v1147_v48 = vsel %vm1146_vm2, %v1065_v59, %v1290_v60 }
 0x2a7   : > { %v1513_v19 = vpop.eup %1512  ;;  %v1148_v33 = vsel %vm1146_vm2, %v1067_v34, %v1291_v63 }
 0x2a8   : > { %v1515_v0 = vpop.eup %1514  ;;  %v1140_v43 = vmul.f32 1.002, %v1513_v19  ;;  %v1155_v7 = vcombine.low %v1147_v48, %v1148_v33 }
 0x2a9   : > { %v1141_v46 = vmul.f32 1.002, %v1515_v0 }
 0x2aa   : > { %v1292_v25 = vadd.f32 -0.001, %v1140_v43  ;;  %1159 = vst [vmem:[%s260_s14] sm:$0xff] %v1155_v7 }
 0x2ab   : > { %v1293_v28 = vadd.f32 -0.001, %v1141_v46 }
 0x2ac   : > { %v1149_v14 = vsel %vm1146_vm2, %v1106_v31, %v1292_v25 }
 0x2ad   : > { %v1150_v27 = vsel %vm1146_vm2, %v1108_v50, %v1293_v28 }
 0x2ae   : > { %v1156_v23 = vcombine.low %v1149_v14, %v1150_v27 }
 0x2b0   : > { %1160 = vst [vmem:[%s260_s14 + $0x8] sm:$0xff] %v1156_v23 }
 0x2b1   : > { %1559 = shalt.err (!%p1556_p5)
}
 0x2b2   : > { %s1560_s29 = scalar_lea.hbm %s2536_s12, 256  ;;  %s1564_s11 = scalar_lea.hbm %s2590_s5, 512 }
 0x2b3   : > { %p1561_p4 = scmp.ne.s32.totalorder %s2536_s12, %s1560_s29  ;;  %p1565_p12 = scmp.lt.u32.totalorder %s2536_s12, %s2590_s5 }
 0x2b4   : > { %p1566_p1 = scmp.lt.u32.totalorder %s1564_s11, %s1560_s29  ;;  %p1568_p8 = scmp.lt.u32.totalorder %s1560_s29, %s2536_s12 }
 0x2b5   : > { %p1562_p7 = pnand %p1561_p4, %p2701_p9 }
 0x2b6   : > { %p1567_p3 = por %p1566_p1, %p1565_p12 }
 0x2b7   : > { %p1563_p10 = pneg %p1562_p7 }
 0x2b8   : > { %p1569_p11 = por %p1568_p8, %p1567_p3 }
 0x2ba   : > { %p1570_p0 = pnand %p1569_p11, %p1563_p10 }
 0x2bc   : > { %1573 = shalt.err (!%p1570_p0)
}
 0x2bd   : > { %1303 = dma.vmem_to_hbm [thread:$0]  (%p2701_p9), %s2538_s17, 256, %s2536_s12, %s1162_s13  }
 0x2be PF: > { %s1190_s16 = sand.u32 1, %s1608_s18   ;;  %p2702_p6 = scmp.ne.s32.totalorder %s2606_s8, 0 }
 0x2bf   : > { %p2703_p13 = scmp.ge.s32.totalorder %s1628_s23, 2  ;;  %s1191_s24 = scalar_lea.sflag [#allocation4], %s1190_s16 }
 0x2c1   : > { %p1310_p2 = pnand %p2703_p13, %p2702_p6 }
 0x2c3   : > { %1603 = dma.done.wait (!%p1310_p2), %s1191_s24, 256  }
 0x2c4   : > { %1605 = vsyncadd (!%p1310_p2), %s1191_s24, 4294967040  ;;  %s21_s23 = sadd.s32 1, %s1628_s23   ;;  %s2704_s18 = smov %s1612_s19 }
 0x2c5   : > { %p18_p5 = scmp.ge.s32.totalorder %s21_s23, 4   ;;  %s2705_s19 = smov %s1616_s20 }
 0x2c6   : > { %s2706_s20 = smov %s1721_s7  ;;  %s2707_s21 = smov %s1624_s22 }
 0x2c7   : > { %s2708_s22 = smov %s2710_s26  ;;  %20 = sbr.rel (!%p18_p5) target bundleno = 6 (0x6), region = 85 }
 0x2ce   :  { %1196 = vsyncpa [#allocation3], 1 }
 0x2cf   :  { %1198 = vsyncpa [#allocation3 + $0x1], 1 }
 0x2d0   :  { %1199 = vsyncpa [#allocation4], 1 }
 0x2d1   :  { %1201 = vsyncpa [#allocation4 + $0x1], 1 }

</bundles_post_ra>
